<compile_context>
chip_gen: v7x
topology: tpu7x:2x2x1
jax: 0.10.0
libtpu: 0.0.40
codegen_flags: <defaults>
</compile_context>

<pallas_src>
import functools

import jax
import jax.numpy as jnp
from jax.experimental import pallas as pl
from jax.experimental.pallas import tpu as pltpu


def _soft_ce_kernel(x_ref, t_ref, o_ref, *, n_valid):
    """x_ref/t_ref: (tile_n, C) row tile.  o_ref: (tile_n, 1) per-row loss."""
    tile_n = x_ref.shape[0]
    x = x_ref[...].astype(jnp.float32)
    t = t_ref[...].astype(jnp.float32)

    # -log_softmax(x)_c = m + lse - x_c, so
    # row loss = sum_c t_c * (m + lse - x_c) = (m + lse) * sum_c t_c - sum_c t_c * x_c
    m = jnp.max(x, axis=-1, keepdims=True)                           # (tile_n, 1)
    lse = jnp.log(jnp.sum(jnp.exp(x - m), axis=-1, keepdims=True))   # (tile_n, 1)
    rowsum_t = jnp.sum(t, axis=-1, keepdims=True)                    # (tile_n, 1)
    dot_tx = jnp.sum(t * x, axis=-1, keepdims=True)                  # (tile_n, 1)
    loss = (m + lse) * rowsum_t - dot_tx

    # Ragged last tile: rows >= n_valid come from an out-of-bounds block read
    # (unspecified data, possibly inf/NaN) -> force their loss to exactly 0
    # before it reaches the output.
    row = (pl.program_id(0) * tile_n
           + jax.lax.broadcasted_iota(jnp.int32, (tile_n, 1), 0))
    o_ref[...] = jnp.where(row < n_valid, loss, 0.0)


def _round_up(v, m):
    return ((v + m - 1) // m) * m


def _vmem_capacity_bytes():
    """Physical VMEM of the attached TPU (128 MiB v5e/v6e, 64 MiB v7x)."""
    try:
        cap = getattr(pltpu.get_tpu_info(), "vmem_capacity_bytes", None)
        if cap:
            return int(cap)
    except Exception:
        pass
    return 64 * 1024 * 1024  # conservative fallback (v7x-sized)


def soft_cross_entropy(inputs, target, *, tile_n=None, vmem_limit_bytes=None):
    """inputs, target: (N, C). Returns scalar loss (float32)."""
    N, C = inputs.shape
    assert target.shape == (N, C), (inputs.shape, target.shape)

    isz_x = jnp.dtype(inputs.dtype).itemsize
    isz_t = jnp.dtype(target.dtype).itemsize
    # Native sublane packing of the narrowest streamed dtype:
    # (8,128) f32, (16,128) bf16, (32,128) int8/fp8.
    pack = {1: 32, 2: 16}.get(min(isz_x, isz_t), 8)

    # ---- generation-aware VMEM budget -------------------------------------
    if vmem_limit_bytes is None:
        # 3/4 of physical VMEM, capped at 64 MiB:
        # v5e/v6e (128 MiB physical) -> 64 MiB scoped; v7x (64 MiB) -> 48 MiB.
        vmem_limit_bytes = min(64 * 1024 * 1024,
                               (_vmem_capacity_bytes() * 3) // 4)
    # Per-step bytes per row: 2 pipeline buffers per native-dtype input block
    # plus ~3 live full-tile f32 temporaries (casts / exp(x - m) / t * x).
    bytes_per_row = C * (2 * (isz_x + isz_t) + 3 * 4)
    usable = max(int(vmem_limit_bytes) - 8 * 1024 * 1024, 2 * 1024 * 1024)

    if tile_n is None:
        tile_n = max(pack, usable // bytes_per_row)
        # Megacore (v7x): keep >= 2 grid steps when there is enough work so
        # dimension_semantics=("parallel",) can shard across both TensorCores.
        if N > 128:
            tile_n = min(tile_n, _round_up(-(-N // 2), pack))

    if tile_n >= N:
        tile_n = N                                    # single full-array tile
    else:
        tile_n = max(pack, (tile_n // pack) * pack)   # dense sublane packing

    num_tiles = -(-N // tile_n)        # cdiv; ragged last tile masked in-kernel
    n_out = num_tiles * tile_n

    kernel = functools.partial(_soft_ce_kernel, n_valid=N)

    grid_spec = pltpu.PrefetchScalarGridSpec(
        num_scalar_prefetch=0,
        grid=(num_tiles,),
        in_specs=[
            pl.BlockSpec((tile_n, C), lambda i: (i, 0)),
            pl.BlockSpec((tile_n, C), lambda i: (i, 0)),
        ],
        out_specs=pl.BlockSpec((tile_n, 1), lambda i: (i, 0)),
    )

    cost = pl.CostEstimate(
        flops=6 * N * C,               # max, sub, adds, mul, row sums
        transcendentals=N * C + N,     # exp per element + log per row
        bytes_accessed=int(N * C * (isz_x + isz_t) + n_out * 4),
    )

    per_row = pl.pallas_call(
        kernel,
        out_shape=jax.ShapeDtypeStruct((n_out, 1), jnp.float32),
        grid_spec=grid_spec,
        compiler_params=pltpu.CompilerParams(
            dimension_semantics=("parallel",),   # disjoint output rows per step
            vmem_limit_bytes=int(vmem_limit_bytes),
        ),
        cost_estimate=cost,
    )(inputs, target)

    # Tiny final reduction + normalization in plain JAX (f32).
    return jnp.sum(per_row) / jnp.float32(N)


if __name__ == "__main__":
    key = jax.random.PRNGKey(0)
    ks = jax.random.split(key, 8)

    def ref_loss(x, t):
        xf = x.astype(jnp.float32)
        tf = t.astype(jnp.float32)
        return jnp.sum(-jax.nn.log_softmax(xf, axis=1) * tf) / xf.shape[0]

    # 1) Small aligned case: single full tile.
    x1 = jax.random.normal(ks[0], (16, 32), dtype=jnp.float32)
    t1 = jax.nn.softmax(jax.random.normal(ks[1], (16, 32), dtype=jnp.float32), axis=1)
    l1 = jax.block_until_ready(soft_cross_entropy(x1, t1))
    assert jnp.allclose(l1, ref_loss(x1, t1), rtol=1e-5, atol=1e-5), (l1, ref_loss(x1, t1))

    # 2) Ragged N, odd C: single unaligned full-array tile (no padding).
    x2 = jax.random.normal(ks[2], (13, 40), dtype=jnp.float32)
    t2 = jax.nn.softmax(jax.random.normal(ks[3], (13, 40), dtype=jnp.float32), axis=1)
    l2 = jax.block_until_ready(soft_cross_entropy(x2, t2))
    assert jnp.allclose(l2, ref_loss(x2, t2), rtol=1e-5, atol=1e-5), (l2, ref_loss(x2, t2))

    # 3) Multi-tile grid with a ragged, in-kernel-masked last tile (explicit tile_n).
    x3 = jax.random.normal(ks[4], (200, 96), dtype=jnp.float32)
    t3 = jax.nn.softmax(jax.random.normal(ks[5], (200, 96), dtype=jnp.float32), axis=1)
    l3 = jax.block_until_ready(soft_cross_entropy(x3, t3, tile_n=64))
    assert jnp.allclose(l3, ref_loss(x3, t3), rtol=1e-5, atol=1e-5), (l3, ref_loss(x3, t3))

    # 3b) Auto-sized multi-tile path (megacore cap forces >= 2 grid steps).
    l3b = jax.block_until_ready(soft_cross_entropy(x3, t3))
    assert jnp.allclose(l3b, ref_loss(x3, t3), rtol=1e-5, atol=1e-5), (l3b, ref_loss(x3, t3))

    # 4) bf16 inputs stream natively (sublane pack = 16) and are cast to f32 in-kernel.
    x4 = jax.random.normal(ks[6], (32, 48), dtype=jnp.float32).astype(jnp.bfloat16)
    t4 = jax.nn.softmax(jax.random.normal(ks[7], (32, 48), dtype=jnp.float32),
                        axis=1).astype(jnp.bfloat16)
    l4 = jax.block_until_ready(soft_cross_entropy(x4, t4))
    assert jnp.allclose(l4, ref_loss(x4, t4), rtol=1e-4, atol=1e-4), (l4, ref_loss(x4, t4))

    print("KERNEL_OK")
</pallas_src>

<mosaic_0001>
module attributes {stable_mosaic.version = 11 : i64} {
  func.func @_soft_ce_kernel(%arg0: i32, %arg1: memref<16x32xf32, #tpu.memory_space<vmem>>, %arg2: memref<16x32xf32, #tpu.memory_space<vmem>>, %arg3: memref<16x1xf32, #tpu.memory_space<vmem>>) attributes {dimension_semantics = [#tpu.dimension_semantics<parallel>], iteration_bounds = array<i64: 1>, scalar_prefetch = 0 : i64, scratch_operands = 0 : i64, tpu.core_type = #tpu.core_type<tc>, window_params = [{transform_indices = @transform_0, window_bounds = array<i64: 16, 32>}, {transform_indices = @transform_1, window_bounds = array<i64: 16, 32>}, {transform_indices = @transform_2, window_bounds = array<i64: 16, 1>}]} {
    %c0 = arith.constant 0 : index
    %c0_0 = arith.constant 0 : index
    %0 = vector.load %arg1[%c0, %c0_0] : memref<16x32xf32, #tpu.memory_space<vmem>>, vector<16x32xf32>
    %c0_1 = arith.constant 0 : index
    %c0_2 = arith.constant 0 : index
    %1 = vector.load %arg2[%c0_1, %c0_2] : memref<16x32xf32, #tpu.memory_space<vmem>>, vector<16x32xf32>
    %cst = arith.constant dense<0xFF800000> : vector<16xf32>
    %2 = vector.multi_reduction <maximumf>, %0, %cst [1] : vector<16x32xf32> to vector<16xf32>
    %3 = vector.shape_cast %2 : vector<16xf32> to vector<16x1xf32>
    %4 = vector.broadcast %3 : vector<16x1xf32> to vector<16x32xf32>
    %5 = arith.subf %0, %4 : vector<16x32xf32>
    %6 = math.exp %5 : vector<16x32xf32>
    %cst_3 = arith.constant dense<0.000000e+00> : vector<16xf32>
    %7 = vector.multi_reduction <add>, %6, %cst_3 [1] : vector<16x32xf32> to vector<16xf32>
    %8 = vector.shape_cast %7 : vector<16xf32> to vector<16x1xf32>
    %9 = math.log %8 : vector<16x1xf32>
    %cst_4 = arith.constant dense<0.000000e+00> : vector<16xf32>
    %10 = vector.multi_reduction <add>, %1, %cst_4 [1] : vector<16x32xf32> to vector<16xf32>
    %11 = vector.shape_cast %10 : vector<16xf32> to vector<16x1xf32>
    %12 = arith.mulf %1, %0 : vector<16x32xf32>
    %cst_5 = arith.constant dense<0.000000e+00> : vector<16xf32>
    %13 = vector.multi_reduction <add>, %12, %cst_5 [1] : vector<16x32xf32> to vector<16xf32>
    %14 = vector.shape_cast %13 : vector<16xf32> to vector<16x1xf32>
    %15 = arith.addf %3, %9 : vector<16x1xf32>
    %16 = arith.mulf %15, %11 : vector<16x1xf32>
    %17 = arith.subf %16, %14 : vector<16x1xf32>
    %c16_i32 = arith.constant 16 : i32
    %18 = arith.muli %arg0, %c16_i32 : i32
    %19 = tpu.iota {dimensions = array<i32: 0>} : vector<16x1xi32>
    %20 = vector.broadcast %18 : i32 to vector<16x1xi32>
    %21 = arith.addi %20, %19 : vector<16x1xi32>
    %c16_i32_6 = arith.constant 16 : i32
    %22 = vector.broadcast %c16_i32_6 : i32 to vector<16x1xi32>
    %23 = arith.cmpi slt, %21, %22 : vector<16x1xi32>
    %cst_7 = arith.constant 0.000000e+00 : f32
    %24 = vector.broadcast %cst_7 : f32 to vector<16x1xf32>
    %25 = arith.select %23, %17, %24 : vector<16x1xi1>, vector<16x1xf32>
    %c0_8 = arith.constant 0 : index
    %c0_9 = arith.constant 0 : index
    %26 = vector.load %arg3[%c0_8, %c0_9] : memref<16x1xf32, #tpu.memory_space<vmem>>, vector<16x1xf32>
    tpu.vector_store %arg3[%c0_8, %c0_9], %25 {strides = array<i32>} : memref<16x1xf32, #tpu.memory_space<vmem>>, vector<16x1xf32>,
    return
  }
  func.func @transform_0(%arg0: i32) -> (i32, i32) {
    %c0_i32 = arith.constant 0 : i32
    %c0_i32_0 = arith.constant 0 : i32
    return %arg0, %c0_i32 : i32, i32
  }
  func.func @transform_1(%arg0: i32) -> (i32, i32) {
    %c0_i32 = arith.constant 0 : i32
    %c0_i32_0 = arith.constant 0 : i32
    return %arg0, %c0_i32 : i32, i32
  }
  func.func @transform_2(%arg0: i32) -> (i32, i32) {
    %c0_i32 = arith.constant 0 : i32
    %c0_i32_0 = arith.constant 0 : i32
    return %arg0, %c0_i32 : i32, i32
  }
}

</mosaic_0001>

<bundles_post_ra>
// kernel: tpu_custom_call.1
= control target key start
LH: loop header
LB: loop body
LE: loop exit
PB: predicated region body
PF: predicated region fallthrough
CT: control target
= control target key end

     0   :  { %7 = vsyncpa [#allocation3], 0  ;;  %s223_s0 = inlined_call_operand.hbm [shape: f32[16,32], index: 0, kind: input, shape index: {}]   ;;  %s224_s1 = inlined_call_operand.hbm [shape: f32[16,32], index: 1, kind: input, shape index: {}]   ;;  %s225_s2 = inlined_call_operand.vmem [shape: f32[16,1], index: 2, kind: output, shape index: {}]  }
   0x1   :  { %8 = vsyncpa [#allocation5], 0  ;;  %s166_s9 = smov [#allocation2]   ;;  %s118_s13 = scalar_lea.hbm %s223_s0, 256 }
   0x2   :  { %s14_s10 = sshll.u32 %s166_s9, 4  ;;  %p119_p0 = scmp.ne.s32.totalorder %s223_s0, %s118_s13  ;;  %s15_s10 = int_to_ptr.vmem [resolvable:$true] %s14_s10 }
   0x3   :  { %p122_p1 = scmp.lt.u32.totalorder %s118_s13, %s223_s0 }
   0x5   :  { %p124_p2 = pnand %p122_p1, %p119_p0 }
   0x7   :  { %127 = shalt.err (!%p124_p2)
}
   0x8   :  { %s128_s18 = scalar_lea.vmem %s15_s10, 256  ;;  %p133_p4 = scmp.lt.s32.totalorder %s15_s10, %s15_s10 }
   0x9   :  { %p129_p3 = scmp.ne.s32.totalorder %s15_s10, %s128_s18  ;;  %p134_p5 = scmp.lt.s32.totalorder %s128_s18, %s128_s18 }
   0xb   :  { %p135_p6 = por %p134_p5, %p133_p4 }
   0xd   :  { %p136_p7 = pnand %p135_p6, %p129_p3 }
   0xf   :  { %139 = shalt.err (!%p136_p7)
}
  0x10   :  { %s167_s19 = smov 128   ;;  %s168_s20 = smov 8  }
  0x11   :  { %20 = dma.hbm_to_vmem [thread:$0]  %s223_s0, 256, %s15_s10, [#allocation3], %s167_s19, %s167_s19, %s168_s20  }
  0x12   :  { %s169_s23 = smov [#allocation4]   ;;  %s140_s27 = scalar_lea.hbm %s224_s1, 256 }
  0x13   :  { %s26_s24 = sshll.u32 %s169_s23, 4  ;;  %p141_p8 = scmp.ne.s32.totalorder %s224_s1, %s140_s27  ;;  %s27_s24 = int_to_ptr.vmem [resolvable:$true] %s26_s24 }
  0x14   :  { %p144_p9 = scmp.lt.u32.totalorder %s140_s27, %s224_s1 }
  0x16   :  { %p146_p10 = pnand %p144_p9, %p141_p8 }
  0x18   :  { %149 = shalt.err (!%p146_p10)
}
  0x19   :  { %s150_s4 = scalar_lea.vmem %s27_s24, 256  ;;  %p155_p12 = scmp.lt.s32.totalorder %s27_s24, %s27_s24 }
  0x1a   :  { %p151_p11 = scmp.ne.s32.totalorder %s27_s24, %s150_s4  ;;  %p156_p13 = scmp.lt.s32.totalorder %s150_s4, %s150_s4 }
  0x1c   :  { %p157_p0 = por %p156_p13, %p155_p12 }
  0x1e   :  { %p158_p1 = pnand %p157_p0, %p151_p11 }
  0x20   :  { %161 = shalt.err (!%p158_p1)
}
  0x21   :  { %32 = dma.hbm_to_vmem [thread:$0]  %s224_s1, 256, %s27_s24, [#allocation5], %s167_s19, %s167_s19, %s168_s20  }
  0x22   :  { %162 = dma.done.wait [#allocation3], 256  }
  0x23   :  { %163 = vsyncadd [#allocation3], 4294967040 }
  0x24   :  { %164 = dma.done.wait [#allocation5], 256  }
  0x25   :  { %165 = vsyncadd [#allocation5], 4294967040  ;;  %vm43_vm0 = vcmask 261120   ;;  %v39_v0 = vld [vmem:[#allocation2] sm:$0xff]  ;;  %v40_v1 = vld [vmem:[#allocation2 + $0x8] sm:$0xff]  ;;  %vm97_vm1 = vcmask 7168  }
  0x26   :  { %v44_v2 = vsel %vm43_vm0, %v39_v0, -inf  ;;  %v47_v3 = vsel %vm43_vm0, %v40_v1, -inf  ;;  %v41_v4 = vld [vmem:[#allocation4] sm:$0xff]  ;;  %v42_v17 = vld [vmem:[#allocation4 + $0x8] sm:$0xff] }
  0x27   :  { %45 = vmax.xlane.f32.xlu0 %v44_v2  ;;  %v66_v5 = vsel %vm43_vm0, %v41_v4, 0.0  ;;  %v72_v6 = vmul.f32 %v41_v4, %v39_v0  ;;  %v69_v19 = vsel %vm43_vm0, %v42_v17, 0.0  ;;  %v73_v20 = vmul.f32 %v42_v17, %v40_v1 }
  0x29   :  { %v74_v7 = vsel %vm43_vm0, %v72_v6, 0.0  ;;  %v77_v21 = vsel %vm43_vm0, %v73_v20, 0.0 }
  0x2b   :  { %48 = vmax.xlane.f32.xlu0 %v47_v3 }
  0x2f   :  { %67 = vadd.xlane.f32.xlu0 %v66_v5 }
  0x33   :  { %75 = vadd.xlane.f32.xlu0 %v74_v7 }
  0xb4   :  { %v46_v8 = vpop.xlane.xlu0 %45 }
  0xb5   :  { %v50_v9 = vsub.f32 %v39_v0, %v46_v8 }
  0xb7   :  { %v52_v10 = vmul.f32 1.442695, %v50_v9 }
  0xb8   :  { %v49_v11 = vpop.xlane.xlu0 %48 }
  0xb9   :  { %110 = vpow2.f32 %v52_v10  ;;  %v51_v12 = vsub.f32 %v40_v1, %v49_v11 }
  0xbb   :  { %v54_v13 = vmul.f32 1.442695, %v51_v12 }
  0xbc   :  { %v68_v24 = vpop.xlane.xlu0 %67 }
  0xbd   :  { %112 = vpow2.f32 %v54_v13 }
  0xc0   :  { %v76_v30 = vpop.xlane.xlu0 %75 }
  0xc3   :  { %v111_v14 = vpop.eup %110 }
  0xc4   :  { %v56_v15 = vsel %vm43_vm0, %v111_v14, 0.0 }
  0xc5   :  { %57 = vadd.xlane.f32.xlu1 %v56_v15 }
  0xc7   :  { %v113_v16 = vpop.eup %112 }
  0xc8   :  { %v59_v18 = vsel %vm43_vm0, %v113_v16, 0.0 }
  0xc9   :  { %60 = vadd.xlane.f32.xlu1 %v59_v18 }
  0xcd   :  { %70 = vadd.xlane.f32.xlu1 %v69_v19 }
  0xd1   :  { %78 = vadd.xlane.f32.xlu1 %v77_v21 }
 0x152   :  { %v58_v22 = vpop.xlane.xlu1 %57 }
 0x153   :  { %114 = vlog2.f32 %v58_v22 }
 0x156   :  { %v61_v23 = vpop.xlane.xlu1 %60 }
 0x157   :  { %116 = vlog2.f32 %v61_v23 }
 0x15a   :  { %v71_v27 = vpop.xlane.xlu1 %70 }
 0x15d   :  { %v115_v25 = vpop.eup %114 }
 0x15e   :  { %v63_v26 = vmul.f32 0.6931472, %v115_v25  ;;  %v79_v35 = vpop.xlane.xlu1 %78 }
 0x160   :  { %v80_v28 = vadd.f32 %v63_v26, %v46_v8 }
 0x161   :  { %v117_v29 = vpop.eup %116 }
 0x162   :  { %v65_v31 = vmul.f32 0.6931472, %v117_v29  ;;  %v82_v32 = vmul.f32 %v80_v28, %v68_v24 }
 0x164   :  { %v81_v33 = vadd.f32 %v65_v31, %v49_v11  ;;  %v84_v34 = vsub.f32 %v82_v32, %v76_v30 }
 0x166   :  { %v83_v36 = vmul.f32 %v81_v33, %v71_v27  ;;  %98 = vst.msk [vmem:[%s225_s2] sm:$0xff] %vm97_vm1, %v84_v34 }
 0x168   :  { %v85_v37 = vsub.f32 %v83_v36, %v79_v35 }
 0x16a   :  { %99 = vst.msk [vmem:[%s225_s2 + $0x8] sm:$0xff] %vm97_vm1, %v85_v37 }
 0x16b   :  { %104 = vsyncpa [#allocation3], 1 }
 0x16c   :  { %105 = vsyncpa [#allocation5], 1 }

</bundles_post_ra>
